<compile_context>
chip_gen: v5e
topology: v5e:2x2
jax: 0.10.0
libtpu: 0.0.40
codegen_flags: <defaults>
</compile_context>

<pallas_src>
import functools

import jax
import jax.numpy as jnp
from jax.experimental import pallas as pl
from jax.experimental.pallas import tpu as pltpu


# ---------------------------------------------------------------------------
# Small planning helpers
# ---------------------------------------------------------------------------
def _cdiv(a, b):
    return -(-a // b)


def _round_up(a, b):
    return _cdiv(a, b) * b


def _vmem_capacity_bytes():
    """Per-core VMEM capacity; falls back to the smallest across generations."""
    try:
        cap = int(pltpu.get_tpu_info().vmem_capacity_bytes)
        if cap > 0:
            return cap
    except Exception:
        pass
    return 64 * 1024 * 1024          # v7x per-TC VMEM; safe lower bound for v5e/v6e.


def _plan(n, c, c_se, hw, dtype_bytes, budget):
    """Returns (nb, n_blocks, thw, n_hw_tiles, has_tail, copy_resident, vmem_est)."""
    # >= 2 N-blocks whenever possible so the "parallel" grid axis feeds both v7x cores.
    nb = n // 2 if (n >= 2 and n % 2 == 0) else n
    nblocks = n // nb
    c_pad = _round_up(c, 8)

    # VMEM costs that do not scale with the spatial tile (double-buffered weights,
    # gate scratch, slack for compiler-internal scratch).
    w_bytes = 2 * 4 * (_round_up(c, 8) * _round_up(c_se, 128)
                       + _round_up(c_se, 8) * _round_up(c, 128)
                       + 8 * _round_up(c_se, 128) + 8 * _round_up(c, 128))
    gate_bytes = nb * c_pad * 128 * 4
    margin = 1 << 20
    fixed = w_bytes + gate_bytes + margin
    avail = max(budget - fixed, 256 * 1024)

    # Per spatial lane: 2x double-buffered x blocks + 2x out blocks + f32 lane accumulator.
    per_lane = nb * c_pad * (4 * dtype_bytes + 4)

    if hw < 128:
        # Single full-extent block (legal: block dim equals the array dim).
        # TODO(synk): for hw < 128 a channels-on-lanes (NHWC) layout would be lane-dense.
        return nb, nblocks, hw, 1, False, False, fixed + per_lane * hw

    hw_floor = (hw // 128) * 128
    thw_cap = max(128, min(hw_floor, (avail // per_lane) // 128 * 128))

    if _cdiv(hw, thw_cap) == 1:
        # One streamed tile covers all of H*W: the phase-1 x index is pinned to the
        # same block, so x is fetched from HBM exactly once already.
        return nb, nblocks, thw_cap, 1, False, False, fixed + per_lane * thw_cap

    # Multiple tiles: prefer keeping x resident in a VMEM scratch so it is read from
    # HBM once (pool phase) and never re-read for the scale phase.
    t = thw_cap
    while t >= 256:
        nt = _cdiv(hw, t)
        xbuf = nb * c_pad * dtype_bytes * nt * t
        if xbuf + per_lane * t <= avail:
            return nb, nblocks, t, nt, (nt * t != hw), True, fixed + per_lane * t + xbuf
        t -= 128

    # Streaming fallback: x is re-read from HBM during the scale phase.
    nt = _cdiv(hw, thw_cap)
    return nb, nblocks, thw_cap, nt, (nt * thw_cap != hw), False, fixed + per_lane * thw_cap


# ---------------------------------------------------------------------------
# Fused kernel: phase 0 = pool + excitation MLP, phase 1 = scale
# ---------------------------------------------------------------------------
def _se_fused_kernel(x_ref, w1_ref, b1_ref, w2_ref, b2_ref, o_ref,
                     acc_ref, gate_ref, *opt_scratch,
                     thw, hw, inv_hw, has_tail, copy_resident):
    x_buf = opt_scratch[0] if copy_resident else None
    p = pl.program_id(1)          # phase: 0 = pool/excite, 1 = scale
    i = pl.program_id(2)          # spatial tile
    nt = pl.num_programs(2)

    @pl.when(p == 0)
    def _pool_phase():
        @pl.when(i == 0)
        def _init():
            acc_ref[...] = jnp.zeros_like(acc_ref)

        xt = x_ref[...]
        if copy_resident:
            x_buf[i] = xt                                  # keep x resident in VMEM

        xf = xt.astype(jnp.float32)
        if has_tail:
            lane = jax.lax.broadcasted_iota(jnp.int32, xf.shape, dimension=2)
            xf = jnp.where(i * thw + lane < hw, xf, 0.0)   # mask OOB lanes of the tail
        acc_ref[...] += xf                                 # per-lane partial sums (VPU)

        @pl.when(i == nt - 1)
        def _excite():
            # Single cross-lane reduce, then the tiny FC -> ReLU -> FC -> sigmoid MLP.
            avg = jnp.sum(acc_ref[...], axis=-1) * inv_hw               # (nb, C)
            h = jnp.dot(avg, w1_ref[...], preferred_element_type=jnp.float32)
            h = jnp.maximum(h + b1_ref[...], 0.0)                       # (nb, C_se)
            z = jnp.dot(h, w2_ref[...], preferred_element_type=jnp.float32)
            z = z + b2_ref[...]                                         # (nb, C)
            gate = 1.0 / (1.0 + jnp.exp(-z))                            # sigmoid
            gate_ref[...] = gate[:, :, None]                # one-time lane->sublane move

    @pl.when(p == 1)
    def _scale_phase():
        xt = x_buf[i] if copy_resident else x_ref[...]
        # gate is (nb, C, 1): pure VPU broadcast along the spatial lane axis.
        o_ref[...] = (xt.astype(jnp.float32) * gate_ref[...]).astype(o_ref.dtype)


# ---------------------------------------------------------------------------
# Python wrapper
# ---------------------------------------------------------------------------
def se_module(x_nchw, params, *, vmem_budget_bytes=None):
    """Squeeze-and-Excitation forward.  x: (N, C, H, W); params from init_se_params."""
    w1, b1, w2, b2 = params
    n, c, h, w = x_nchw.shape
    c_se = w1.shape[1]
    hw = h * w
    x = x_nchw.reshape(n, c, hw)                 # free reshape, stays NCHW / lane-dense
    db = x.dtype.itemsize

    vmem_cap = _vmem_capacity_bytes()
    budget = int(vmem_cap * 0.70) if vmem_budget_bytes is None else int(vmem_budget_bytes)

    nb, nblocks, thw, nt, has_tail, copy_resident, vmem_est = _plan(
        n, c, c_se, hw, db, budget)

    # Explicit scoped-VMEM limit derived from the planned footprint (with headroom),
    # never above ~92% of the physical per-core capacity.
    vmem_limit = int(min(vmem_cap * 0.92, max(32 * 1024 * 1024, vmem_est * 1.3)))

    kernel = functools.partial(
        _se_fused_kernel, thw=thw, hw=hw, inv_hw=1.0 / float(hw),
        has_tail=has_tail, copy_resident=copy_resident)

    if copy_resident:
        # Phase 1 reads x from the VMEM scratch; pin the HBM index so no re-fetch happens.
        x_index = lambda b, p, i: (b, 0, i + p * (nt - 1 - i))
    else:
        x_index = lambda b, p, i: (b, 0, i)
    # Output block index is pinned during phase 0 (never written, never flushed) and
    # follows the spatial tile during phase 1.
    out_index = lambda b, p, i: (b, 0, i * p)

    scratch = [
        pltpu.VMEM((nb, c, thw), jnp.float32),       # per-lane partial-sum accumulator
        pltpu.VMEM((nb, c, 1), jnp.float32),         # gate, aligned with x's layout
    ]
    if copy_resident:
        scratch.append(pltpu.VMEM((nt, nb, c, thw), x.dtype))   # x kept resident in VMEM

    out = pl.pallas_call(
        kernel,
        out_shape=jax.ShapeDtypeStruct((n, c, hw), x.dtype),
        grid_spec=pltpu.PrefetchScalarGridSpec(
            num_scalar_prefetch=0,
            grid=(nblocks, 2, nt),
            in_specs=[
                pl.BlockSpec((nb, c, thw), x_index),
                pl.BlockSpec((c, c_se), lambda b, p, i: (0, 0)),
                pl.BlockSpec((1, c_se), lambda b, p, i: (0, 0)),
                pl.BlockSpec((c_se, c), lambda b, p, i: (0, 0)),
                pl.BlockSpec((1, c), lambda b, p, i: (0, 0)),
            ],
            out_specs=pl.BlockSpec((nb, c, thw), out_index),
            scratch_shapes=scratch,
        ),
        compiler_params=pltpu.CompilerParams(
            dimension_semantics=("parallel", "arbitrary", "arbitrary"),
            vmem_limit_bytes=vmem_limit,
        ),
    )(x, w1, b1, w2, b2)

    return out.reshape(n, c, h, w)


# ---------------------------------------------------------------------------
# Deterministic parameter init (matches shapes of nn.Conv2d(w_in, w_se, 1) etc.)
# ---------------------------------------------------------------------------
def init_se_params(key, w_in, w_se):
    k1, k2, k3, k4 = jax.random.split(key, 4)
    conv1_w = jax.random.normal(k1, (w_se, w_in), jnp.float32) / jnp.sqrt(w_in)
    conv1_b = 0.1 * jax.random.normal(k2, (w_se,), jnp.float32)
    conv2_w = jax.random.normal(k3, (w_in, w_se), jnp.float32) / jnp.sqrt(w_se)
    conv2_b = 0.1 * jax.random.normal(k4, (w_in,), jnp.float32)
    # Matmul form:  avg @ W1 + b1  ->  relu  ->  @ W2 + b2  ->  sigmoid
    w1 = conv1_w.T                       # (w_in, w_se)
    b1 = conv1_b.reshape(1, w_se)
    w2 = conv2_w.T                       # (w_se, w_in)
    b2 = conv2_b.reshape(1, w_in)
    return (w1, b1, w2, b2)


def se_reference(x_nchw, params):
    """Plain-JAX reference for correctness checking."""
    w1, b1, w2, b2 = params
    y = jnp.mean(x_nchw, axis=(2, 3))                  # (N, C)
    y = jnp.maximum(y @ w1 + b1, 0.0)
    y = jax.nn.sigmoid(y @ w2 + b2)
    return x_nchw * y[:, :, None, None]


# ---------------------------------------------------------------------------
if __name__ == "__main__":
    root = jax.random.PRNGKey(0)

    cases = [
        # (n, c, c_se, h, w, forced_vmem_budget)
        (2, 32, 8, 16, 16, None),          # hw=256: one 256-lane tile, x read once
        (2, 64, 16, 56, 56, None),         # hw=3136: VMEM-resident x_buf + masked tail
        (2, 256, 64, 56, 56, 4_500_000),   # tight budget -> streaming (re-read) path
        (2, 32, 8, 8, 8, None),            # hw=64 < 128: single full block
    ]

    for idx, (n, c, c_se, h, w, budget) in enumerate(cases):
        kp, kx = jax.random.split(jax.random.fold_in(root, idx))
        params = init_se_params(kp, c, c_se)
        x = jax.random.normal(kx, (n, c, h, w), jnp.float32)

        fwd = jax.jit(functools.partial(se_module, vmem_budget_bytes=budget))
        out = fwd(x, params)
        jax.block_until_ready(out)

        assert out.shape == x.shape, (idx, out.shape)
        assert out.dtype == x.dtype, (idx, out.dtype)
        assert bool(jnp.all(jnp.isfinite(out))), idx

        ref = se_reference(x, params)
        err = float(jnp.max(jnp.abs(out - ref)))
        assert err < 2e-3, f"case {idx}: max abs error vs reference: {err}"

    print("KERNEL_OK")
</pallas_src>

<mosaic_0001>
module attributes {stable_mosaic.version = 11 : i64} {
  func.func @_se_fused_kernel(%arg0: i32, %arg1: i32, %arg2: i32, %arg3: memref<1x32x256xf32, #tpu.memory_space<vmem>>, %arg4: memref<32x8xf32, #tpu.memory_space<vmem>>, %arg5: memref<1x8xf32, #tpu.memory_space<vmem>>, %arg6: memref<8x32xf32, #tpu.memory_space<vmem>>, %arg7: memref<1x32xf32, #tpu.memory_space<vmem>>, %arg8: memref<1x32x256xf32, #tpu.memory_space<vmem>>, %arg9: memref<1x32x256xf32, #tpu.memory_space<vmem>>, %arg10: memref<1x32x1xf32, #tpu.memory_space<vmem>>) attributes {dimension_semantics = [#tpu.dimension_semantics<parallel>, #tpu.dimension_semantics<arbitrary>, #tpu.dimension_semantics<arbitrary>], iteration_bounds = array<i64: 2, 2, 1>, scalar_prefetch = 0 : i64, scratch_operands = 2 : i64, tpu.core_type = #tpu.core_type<tc>, window_params = [{transform_indices = @transform_0, window_bounds = array<i64: 1, 32, 256>}, {pipeline_mode = #tpu.pipeline_mode<synchronous>, transform_indices = @transform_1, window_bounds = array<i64: 32, 8>}, {pipeline_mode = #tpu.pipeline_mode<synchronous>, transform_indices = @transform_2, window_bounds = array<i64: 1, 8>}, {pipeline_mode = #tpu.pipeline_mode<synchronous>, transform_indices = @transform_3, window_bounds = array<i64: 8, 32>}, {pipeline_mode = #tpu.pipeline_mode<synchronous>, transform_indices = @transform_4, window_bounds = array<i64: 1, 32>}, {transform_indices = @transform_5, window_bounds = array<i64: 1, 32, 256>}]} {
    %c0_i32 = arith.constant 0 : i32
    %0 = arith.cmpi eq, %arg1, %c0_i32 : i32
    %1 = arith.extui %0 : i1 to i32
    %c0_i32_0 = arith.constant 0 : i32
    %2 = arith.cmpi ne, %1, %c0_i32_0 : i32
    scf.if %2 {
      %c0_i32_2 = arith.constant 0 : i32
      %6 = arith.cmpi eq, %arg2, %c0_i32_2 : i32
      %7 = arith.extui %6 : i1 to i32
      %c0_i32_3 = arith.constant 0 : i32
      %8 = arith.cmpi ne, %7, %c0_i32_3 : i32
      scf.if %8 {
        %cst = arith.constant 0.000000e+00 : f32
        %16 = vector.broadcast %cst : f32 to vector<1x32x256xf32>
        %c0_14 = arith.constant 0 : index
        %c0_15 = arith.constant 0 : index
        %c0_16 = arith.constant 0 : index
        %17 = vector.load %arg9[%c0_14, %c0_15, %c0_16] : memref<1x32x256xf32, #tpu.memory_space<vmem>>, vector<1x32x256xf32>
        tpu.vector_store %arg9[%c0_14, %c0_15, %c0_16], %16 {strides = array<i32>} : memref<1x32x256xf32, #tpu.memory_space<vmem>>, vector<1x32x256xf32>,
      } else {
      }
      %c0 = arith.constant 0 : index
      %c0_4 = arith.constant 0 : index
      %c0_5 = arith.constant 0 : index
      %9 = vector.load %arg3[%c0, %c0_4, %c0_5] : memref<1x32x256xf32, #tpu.memory_space<vmem>>, vector<1x32x256xf32>
      %c0_6 = arith.constant 0 : index
      %c0_7 = arith.constant 0 : index
      %c0_8 = arith.constant 0 : index
      %10 = vector.load %arg9[%c0_6, %c0_7, %c0_8] : memref<1x32x256xf32, #tpu.memory_space<vmem>>, vector<1x32x256xf32>
      %11 = arith.addf %10, %9 : vector<1x32x256xf32>
      %c0_9 = arith.constant 0 : index
      %c0_10 = arith.constant 0 : index
      %c0_11 = arith.constant 0 : index
      %12 = vector.load %arg9[%c0_9, %c0_10, %c0_11] : memref<1x32x256xf32, #tpu.memory_space<vmem>>, vector<1x32x256xf32>
      tpu.vector_store %arg9[%c0_9, %c0_10, %c0_11], %11 {strides = array<i32>} : memref<1x32x256xf32, #tpu.memory_space<vmem>>, vector<1x32x256xf32>,
      %c0_i32_12 = arith.constant 0 : i32
      %13 = arith.cmpi eq, %arg2, %c0_i32_12 : i32
      %14 = arith.extui %13 : i1 to i32
      %c0_i32_13 = arith.constant 0 : i32
      %15 = arith.cmpi ne, %14, %c0_i32_13 : i32
      scf.if %15 {
        %c0_14 = arith.constant 0 : index
        %c0_15 = arith.constant 0 : index
        %c0_16 = arith.constant 0 : index
        %16 = vector.load %arg9[%c0_14, %c0_15, %c0_16] : memref<1x32x256xf32, #tpu.memory_space<vmem>>, vector<1x32x256xf32>
        %cst = arith.constant dense<0.000000e+00> : vector<1x32xf32>
        %17 = vector.multi_reduction <add>, %16, %cst [2] : vector<1x32x256xf32> to vector<1x32xf32>
        %cst_17 = arith.constant 3.906250e-03 : f32
        %18 = vector.broadcast %cst_17 : f32 to vector<1x32xf32>
        %19 = arith.mulf %17, %18 : vector<1x32xf32>
        %c0_18 = arith.constant 0 : index
        %c0_19 = arith.constant 0 : index
        %20 = vector.load %arg4[%c0_18, %c0_19] : memref<32x8xf32, #tpu.memory_space<vmem>>, vector<32x8xf32>
        %cst_20 = arith.constant dense<0.000000e+00> : vector<1x8xf32>
        %21 = tpu.matmul %19, %20, %cst_20 {dimension_numbers = #tpu.dot_dimension_numbers<[1], [0], [0], [1], [0, 0, 1, 1], [], []>} : vector<1x32xf32>, vector<32x8xf32>, vector<1x8xf32> -> vector<1x8xf32>
        %c0_21 = arith.constant 0 : index
        %c0_22 = arith.constant 0 : index
        %22 = vector.load %arg5[%c0_21, %c0_22] : memref<1x8xf32, #tpu.memory_space<vmem>>, vector<1x8xf32>
        %23 = arith.addf %21, %22 : vector<1x8xf32>
        %cst_23 = arith.constant 0.000000e+00 : f32
        %24 = vector.broadcast %cst_23 : f32 to vector<1x8xf32>
        %25 = arith.maximumf %23, %24 : vector<1x8xf32>
        %c0_24 = arith.constant 0 : index
        %c0_25 = arith.constant 0 : index
        %26 = vector.load %arg6[%c0_24, %c0_25] : memref<8x32xf32, #tpu.memory_space<vmem>>, vector<8x32xf32>
        %cst_26 = arith.constant dense<0.000000e+00> : vector<1x32xf32>
        %27 = tpu.matmul %25, %26, %cst_26 {dimension_numbers = #tpu.dot_dimension_numbers<[1], [0], [0], [1], [0, 0, 1, 1], [], []>} : vector<1x8xf32>, vector<8x32xf32>, vector<1x32xf32> -> vector<1x32xf32>
        %c0_27 = arith.constant 0 : index
        %c0_28 = arith.constant 0 : index
        %28 = vector.load %arg7[%c0_27, %c0_28] : memref<1x32xf32, #tpu.memory_space<vmem>>, vector<1x32xf32>
        %29 = arith.addf %27, %28 : vector<1x32xf32>
        %cst_29 = arith.constant 0.000000e+00 : f32
        %30 = vector.broadcast %cst_29 : f32 to vector<1x32xf32>
        %31 = arith.subf %30, %29 : vector<1x32xf32>
        %32 = math.exp %31 : vector<1x32xf32>
        %cst_30 = arith.constant 1.000000e+00 : f32
        %33 = vector.broadcast %cst_30 : f32 to vector<1x32xf32>
        %34 = arith.addf %33, %32 : vector<1x32xf32>
        %cst_31 = arith.constant 1.000000e+00 : f32
        %35 = vector.broadcast %cst_31 : f32 to vector<1x32xf32>
        %36 = arith.divf %35, %34 : vector<1x32xf32>
        %37 = vector.shape_cast %36 : vector<1x32xf32> to vector<1x32x1xf32>
        %c0_32 = arith.constant 0 : index
        %c0_33 = arith.constant 0 : index
        %c0_34 = arith.constant 0 : index
        %38 = vector.load %arg10[%c0_32, %c0_33, %c0_34] : memref<1x32x1xf32, #tpu.memory_space<vmem>>, vector<1x32x1xf32>
        tpu.vector_store %arg10[%c0_32, %c0_33, %c0_34], %37 {strides = array<i32>} : memref<1x32x1xf32, #tpu.memory_space<vmem>>, vector<1x32x1xf32>,
      } else {
      }
    } else {
    }
    %c1_i32 = arith.constant 1 : i32
    %3 = arith.cmpi eq, %arg1, %c1_i32 : i32
    %4 = arith.extui %3 : i1 to i32
    %c0_i32_1 = arith.constant 0 : i32
    %5 = arith.cmpi ne, %4, %c0_i32_1 : i32
    scf.if %5 {
      %c0 = arith.constant 0 : index
      %c0_2 = arith.constant 0 : index
      %c0_3 = arith.constant 0 : index
      %6 = vector.load %arg3[%c0, %c0_2, %c0_3] : memref<1x32x256xf32, #tpu.memory_space<vmem>>, vector<1x32x256xf32>
      %c0_4 = arith.constant 0 : index
      %c0_5 = arith.constant 0 : index
      %c0_6 = arith.constant 0 : index
      %7 = vector.load %arg10[%c0_4, %c0_5, %c0_6] : memref<1x32x1xf32, #tpu.memory_space<vmem>>, vector<1x32x1xf32>
      %8 = vector.broadcast %7 : vector<1x32x1xf32> to vector<1x32x256xf32>
      %9 = arith.mulf %6, %8 : vector<1x32x256xf32>
      %c0_7 = arith.constant 0 : index
      %c0_8 = arith.constant 0 : index
      %c0_9 = arith.constant 0 : index
      %10 = vector.load %arg8[%c0_7, %c0_8, %c0_9] : memref<1x32x256xf32, #tpu.memory_space<vmem>>, vector<1x32x256xf32>
      tpu.vector_store %arg8[%c0_7, %c0_8, %c0_9], %9 {strides = array<i32>} : memref<1x32x256xf32, #tpu.memory_space<vmem>>, vector<1x32x256xf32>,
    } else {
    }
    return
  }
  func.func @transform_0(%arg0: i32, %arg1: i32, %arg2: i32) -> (i32, i32, i32) {
    %c0_i32 = arith.constant 0 : i32
    %c0_i32_0 = arith.constant 0 : i32
    return %arg0, %c0_i32, %arg2 : i32, i32, i32
  }
  func.func @transform_1(%arg0: i32, %arg1: i32, %arg2: i32) -> (i32, i32) {
    %c0_i32 = arith.constant 0 : i32
    %c0_i32_0 = arith.constant 0 : i32
    %c0_i32_1 = arith.constant 0 : i32
    return %c0_i32, %c0_i32_0 : i32, i32
  }
  func.func @transform_2(%arg0: i32, %arg1: i32, %arg2: i32) -> (i32, i32) {
    %c0_i32 = arith.constant 0 : i32
    %c0_i32_0 = arith.constant 0 : i32
    %c0_i32_1 = arith.constant 0 : i32
    return %c0_i32, %c0_i32_0 : i32, i32
  }
  func.func @transform_3(%arg0: i32, %arg1: i32, %arg2: i32) -> (i32, i32) {
    %c0_i32 = arith.constant 0 : i32
    %c0_i32_0 = arith.constant 0 : i32
    %c0_i32_1 = arith.constant 0 : i32
    return %c0_i32, %c0_i32_0 : i32, i32
  }
  func.func @transform_4(%arg0: i32, %arg1: i32, %arg2: i32) -> (i32, i32) {
    %c0_i32 = arith.constant 0 : i32
    %c0_i32_0 = arith.constant 0 : i32
    %c0_i32_1 = arith.constant 0 : i32
    return %c0_i32, %c0_i32_0 : i32, i32
  }
  func.func @transform_5(%arg0: i32, %arg1: i32, %arg2: i32) -> (i32, i32, i32) {
    %0 = arith.muli %arg2, %arg1 : i32
    %c0_i32 = arith.constant 0 : i32
    %c0_i32_0 = arith.constant 0 : i32
    return %arg0, %c0_i32, %0 : i32, i32, i32
  }
}

</mosaic_0001>

<bundles_post_ra>
// kernel: se_module.1
= control target key start
LH: loop header
LB: loop body
LE: loop exit
PB: predicated region body
PF: predicated region fallthrough
CT: control target
= control target key end

     0   :  { %s762_s18 = smov 0   ;;  %s764_s19 = smov 0   ;;  %s866_s0 = inlined_call_operand.vmem [shape: f32[2,32,256], index: 0, kind: input, shape index: {}]   ;;  %s867_s1 = inlined_call_operand.vmem [shape: f32[32,8], index: 1, kind: input, shape index: {}]   ;;  %s868_s2 = inlined_call_operand.vmem [shape: f32[1,8], index: 2, kind: input, shape index: {}]   ;;  %s869_s3 = inlined_call_operand.vmem [shape: f32[8,32], index: 3, kind: input, shape index: {}]   ;;  %s870_s4 = inlined_call_operand.vmem [shape: f32[1,32], index: 4, kind: input, shape index: {}]   ;;  %s871_s5 = inlined_call_operand.vmem [shape: f32[2,32,256], index: 5, kind: output, shape index: {}]  }
   0x1   :  { %s766_s20 = smov 0   ;;  %s768_s21 = smov 0  }
   0x2   :  { %s770_s22 = smov 0  }
   0x3 LB: > { %s30_s23 = sadd.s32 1, %s721_s20  ;;  %s34_s24 = sadd.s32 1, %s725_s21  ;;  %s729_s22 = sphi %s770_s22, %s15_s22   ;;  %s725_s21 = sphi %s768_s21, %s875_s21   ;;  %s721_s20 = sphi %s766_s20, %s874_s20   ;;  %s717_s19 = sphi %s764_s19, %s873_s19   ;;  %s713_s18 = sphi %s762_s18, %s872_s18  }
   0x4   : > { %p32_p0 = scmp.ge.s32.totalorder %s30_s23, 2  ;;  %p626_p1 = scmp.ge.s32.totalorder %s729_s22, 1 }
   0x5   : > { %p217_p2 = scmp.lt.s32.totalorder %s729_s22, 5 }
   0x6   : > { %s877_s23 = smov (%p32_p0, %s30_s23), 0  ;;  %s879_s24 = smov (!%p32_p0, %s34_s24), %s725_s21 }
   0x7   : > { %p218_p3 = pnand %p626_p1, %p217_p2  ;;  %p36_p4 = scmp.ge.s32.totalorder %s879_s24, 2 }
   0x8   : > { %p255_p5 = scmp.lt.s32.totalorder (!%p218_p3), %s717_s19, 1  ;;  %p631_p6 = scmp.ne.s32.totalorder (!%p218_p3), %s713_s18, 0 }
   0x9   : > { %s881_s24 = smov (%p36_p4, %s879_s24), 0  ;;  %221 = sbr.rel (%p218_p3) target bundleno = 698 (0x2ba), region = 40 }
   0xe   : > { %s883_s19 = smov (!%p255_p5, %s717_s19), 1  ;;  %279 = sbr.rel (%p631_p6) target bundleno = 560 (0x230), region = 44 }
   0xf   : > { %s637_s25 = sshll.u32 %s883_s19, 6 }
  0x10   : > { %s797_s28 = scalar_lea.vmem %s866_s0, %s637_s25  ;;  %s802_s6 = scalar_lea.vmem %s871_s5, %s637_s25 }
  0x13   : > { %v292_v0 = vld [vmem:[%s797_s28] sm:$0xff]  ;;  %v293_v1 = vld [vmem:[%s797_s28 + $0x8] sm:$0xff]  ;;  %v294_v6 = vld [vmem:[%s797_s28 + $0x10] sm:$0xff]  ;;  %v360_v16 = vlaneseq  ;;  %vm365_vm0 = vcmask 130112   ;;  %vm369_vm1 = vcmask 195712   ;;  %vm373_vm2 = vcmask 261312  }
  0x14   : > { %v296_v2 = vld [vmem:[%s797_s28 + $0x20] sm:$0xff]  ;;  %v335_v3 = vadd.f32 %v293_v1, %v292_v0  ;;  %v297_v4 = vld [vmem:[%s797_s28 + $0x28] sm:$0xff]  ;;  %v295_v7 = vld [vmem:[%s797_s28 + $0x18] sm:$0xff]  ;;  %vm375_vm3 = vcmask 261120   ;;  %vm401_vm4 = vcmask 64512   ;;  %vm469_vm9 = vcmask 7168  }
  0x15   : > { %v341_v5 = vadd.f32 %v297_v4, %v296_v2  ;;  %v298_v8 = vld [vmem:[%s797_s28 + $0x30] sm:$0xff]  ;;  %v299_v9 = vld [vmem:[%s797_s28 + $0x38] sm:$0xff]  ;;  %v338_v10 = vadd.f32 %v295_v7, %v294_v6  ;;  %v352_v14 = vld [vmem:[%s867_s1 + $0x8] sm:$0xff]  ;;  %v361_v19 = vand.u32 127, %v360_v16  ;;  %v446_v41 = vshrl.u32 %v360_v16, 7 }
  0x16   : > { %336 = vadd.xlane.f32.xlu0 %v335_v3  ;;  %v344_v11 = vadd.f32 %v299_v9, %v298_v8  ;;  %v354_v12 = vld [vmem:[%s867_s1 + $0x18] sm:$0xff]  ;;  %v353_v13 = vld [vmem:[%s867_s1 + $0x10] sm:$0xff]  ;;  %v351_v15 = vld [vmem:[%s867_s1] sm:$0xff] }
  0x17   : > { %342 = vadd.xlane.f32.xlu1 %v341_v5  ;;  %390 = vmatpush.msra.mxu0 %v354_v12  ;;  %v363_v21 = vadd.s32 4294967288, %v361_v19  ;;  %v367_v22 = vadd.s32 4294967280, %v361_v19  ;;  %v371_v25 = vadd.s32 4294967272, %v361_v19  ;;  %v399_v36 = vld [vmem:[%s869_s3] sm:$0xff]  ;;  %v465_v42 = vadd.s32 24, %v446_v41 }
  0x18   : > { %420 = vmatpush.msra.mxu1 %v399_v36  ;;  %v355_v37 = vld [vmem:[%s868_s2] sm:$0x1]  ;;  %680 = vset.pattern.permute.xlu2 %v446_v41  ;;  %v459_v43 = vadd.s32 16, %v446_v41  ;;  %v453_v62 = vadd.s32 8, %v446_v41 }
  0x19   : > { %391 = vmatpush.msra.mxu0 %v353_v13  ;;  %683 = vset.pattern.permute.xlu1 %v465_v42  ;;  %v400_v44 = vld [vmem:[%s870_s4] sm:$0x1] }
  0x1a   : > { %682 = vset.pattern.permute.xlu0 %v459_v43 }
  0x1b   : > { %392 = vmatpush.msra.mxu0 %v352_v14 }
  0x1d   : > { %393 = vmatpush.msra.mxu0 %v351_v15 }
  0x1e   : > { %339 = vadd.xlane.f32.xlu0 %v338_v10 }
  0x1f   : > { %345 = vadd.xlane.f32.xlu1 %v344_v11 }
  0x89   : > { %v337_v17 = vpop.xlane.xlu0 %336 }
  0x8a   : > { %v343_v18 = vpop.xlane.xlu1 %342  ;;  %v347_v20 = vmul.f32 0.00390625, %v337_v17 }
  0x8b   : > { %v349_v23 = vmul.f32 0.00390625, %v343_v18 }
  0x8c   : > { %v362_v29 = vperm.slane %v347_v20, %v361_v19 }
  0x8d   : > { %v368_v31 = vperm.slane %v349_v23, %v367_v22 }
  0x91   : > { %v340_v24 = vpop.xlane.xlu0 %339 }
  0x92   : > { %v348_v26 = vmul.f32 0.00390625, %v340_v24  ;;  %v346_v27 = vpop.xlane.xlu1 %345 }
  0x93   : > { %v350_v28 = vmul.f32 0.00390625, %v346_v27 }
  0x94   : > { %v364_v30 = vperm.slane %v348_v26, %v363_v21 }
  0x95   : > { %v372_v32 = vperm.slane %v350_v28, %v371_v25 }
  0x96   : > { %v366_v33 = vsel %vm365_vm0, %v364_v30, %v362_v29 }
  0x97   : > { %v370_v34 = vsel %vm369_vm1, %v368_v31, %v366_v33 }
  0x98   : > { %v374_v35 = vsel %vm373_vm2, %v372_v32, %v370_v34 }
  0x99   : > { %632 = vmatmul.msk.f32.vlgmr.msra.gmra.mxu0 %vm375_vm3, %v374_v35 }
 0x116   : > { %v395_v38 = vpop.f32.mrf.mxu0 }
 0x117   : > { %v396_v39 = vadd.f32 %v395_v38, %v355_v37 }
 0x119   : > { %v398_v40 = vmax.f32 %v396_v39, 0.0 }
 0x11b   : > { %633 = vmatmul.msk.f32.vlgmr.msra.gmra.mxu1 %vm401_vm4, %v398_v40 }
 0x198   : > { %v422_v45 = vpop.f32.mrf.mxu1 }
 0x199   : > { %v423_v46 = vadd.f32 %v422_v45, %v400_v44 }
 0x19b   : > { %v425_v47 = vsub.f32 0.0, %v423_v46 }
 0x19d   : > { %v426_v48 = vmul.f32 1.442695, %v425_v47 }
 0x19f   : > { %685 = vpow2.f32 %v426_v48 }
 0x1a5   : > { %v686_v49 = vpop.eup %685 }
 0x1a6   : > { %v428_v50 = vadd.f32 1.0, %v686_v49 }
 0x1a8   : > { %687 = vrcp.f32 %v428_v50  ;;  %v440_v54 = vand.u32 2147483648, %v428_v50  ;;  %v438_v56 = vand.u32 2147483647, %v428_v50  ;;  %vm434_vm6 = vweird.f32 %v428_v50 }
 0x1aa   : > { %v441_v58 = vor.u32 1.1754944e-38, %v440_v54  ;;  %vm439_vm8 = vcmp.eq.f32.partialorder %v438_v56, 8.507059e+37 }
 0x1ae   : > { %v688_v51 = vpop.eup %687 }
 0x1af   : > { %v430_v52 = vmul.f32 %v688_v51, %v428_v50  ;;  %vm435_vm5 = vweird.f32 %v688_v51 }
 0x1b0   : > { %vm436_vm7 = vmor %vm434_vm6, %vm435_vm5 }
 0x1b1   : > { %v431_v53 = vsub.f32 1.0, %v430_v52 }
 0x1b3   : > { %v432_v55 = vmul.f32 %v688_v51, %v431_v53 }
 0x1b5   : > { %v433_v57 = vadd.f32 %v688_v51, %v432_v55 }
 0x1b7   : > { %v437_v59 = vsel %vm436_vm7, %v688_v51, %v433_v57 }
 0x1b8   : > { %v442_v60 = vsel %vm439_vm8, %v441_v58, %v437_v59 }
 0x1b9   : > { %v444_v61 = vperm.slane %v442_v60, 0 }
 0x1bb   : > { %467 = vperm.xlu1 %683, %v444_v61   ;;  %461 = vperm.xlu0 %682, %v444_v61  }
 0x1bc   : > { %449 = vperm.xlu2 %680, %v444_v61  }
 0x1c3   : > { %684 = vset.pattern.permute.xlu0 %v465_v42 }
 0x1c4   : > { %681 = vset.pattern.permute.xlu2 %v453_v62 }
 0x1cc   : > { %455 = vperm.xlu2 %681, %v444_v61  }
 0x216   : > { %v450_v63 = vpop.permute.xlu2 %449 }
 0x217   : > { %470 = vst.msk [vmem:[#allocation3] sm:$0xff] %vm469_vm9, %v450_v63 }
 0x226   : > { %v456_v0 = vpop.permute.xlu2 %455 }
 0x227   : > { %471 = vst.msk [vmem:[#allocation3 + $0x8] sm:$0xff] %vm469_vm9, %v456_v0 }
 0x22d   : > { %v468_v1 = vpop.permute.xlu1 %467  ;;  %v462_v2 = vpop.permute.xlu0 %461 }
 0x22e   : > { %473 = vst.msk [vmem:[#allocation3 + $0x18] sm:$0xff] %vm469_vm9, %v468_v1 }
 0x22f   : > { %472 = vst.msk [vmem:[#allocation3 + $0x10] sm:$0xff] %vm469_vm9, %v462_v2 }
 0x230 PF: > { %p634_p7 = scmp.ne.s32.totalorder %s713_s18, 1 }
 0x232   : > { %477 = sbr.rel (%p634_p7) target bundleno = 698 (0x2ba), region = 56 }
 0x237   : > { %v488_v3 = vld [vmem:[#allocation3 + $0x10] sm:$0xff]  ;;  %v486_v4 = vld [vmem:[#allocation3] sm:$0xff]  ;;  %v731_v5 = vmov 0   ;;  %v489_v6 = vld [vmem:[#allocation3 + $0x18] sm:$0xff] }
 0x238   : > { %690 = vset.pattern.permute.xlu1 %v731_v5  ;;  %689 = vset.pattern.permute.xlu0 %v731_v5  ;;  %v487_v7 = vld [vmem:[#allocation3 + $0x8] sm:$0xff]  ;;  %v482_v8 = vld [vmem:[%s797_s28 + $0x20] sm:$0xff]  ;;  %v484_v18 = vld [vmem:[%s797_s28 + $0x30] sm:$0xff] }
 0x239   : > { %502 = vperm.xlu1 %690, %v488_v3   ;;  %492 = vperm.xlu0 %689, %v486_v4   ;;  %v483_v9 = vld [vmem:[%s797_s28 + $0x28] sm:$0xff]  ;;  %v478_v10 = vld [vmem:[%s797_s28] sm:$0xff]  ;;  %v485_v19 = vld [vmem:[%s797_s28 + $0x38] sm:$0xff] }
 0x23a   : > { %v479_v11 = vld [vmem:[%s797_s28 + $0x8] sm:$0xff]  ;;  %v480_v20 = vld [vmem:[%s797_s28 + $0x10] sm:$0xff]  ;;  %v481_v21 = vld [vmem:[%s797_s28 + $0x18] sm:$0xff] }
 0x241   : > { %507 = vperm.xlu1 %690, %v489_v6   ;;  %497 = vperm.xlu0 %689, %v487_v7  }
 0x2ab   : > { %v503_v12 = vpop.permute.xlu1 %502  ;;  %v493_v13 = vpop.permute.xlu0 %492 }
 0x2ac   : > { %v514_v14 = vmul.f32 %v503_v12, %v482_v8  ;;  %v515_v15 = vmul.f32 %v503_v12, %v483_v9  ;;  %v510_v16 = vmul.f32 %v493_v13, %v478_v10  ;;  %v511_v17 = vmul.f32 %v493_v13, %v479_v11 }
 0x2ae   : > { %522 = vst [vmem:[%s802_s6 + $0x20] sm:$0xff] %v514_v14 }
 0x2af   : > { %523 = vst [vmem:[%s802_s6 + $0x28] sm:$0xff] %v515_v15 }
 0x2b0   : > { %518 = vst [vmem:[%s802_s6] sm:$0xff] %v510_v16 }
 0x2b1   : > { %519 = vst [vmem:[%s802_s6 + $0x8] sm:$0xff] %v511_v17 }
 0x2b3   : > { %v508_v22 = vpop.permute.xlu1 %507  ;;  %v498_v23 = vpop.permute.xlu0 %497 }
 0x2b4   : > { %v516_v24 = vmul.f32 %v508_v22, %v484_v18  ;;  %v517_v25 = vmul.f32 %v508_v22, %v485_v19  ;;  %v512_v26 = vmul.f32 %v498_v23, %v480_v20  ;;  %v513_v27 = vmul.f32 %v498_v23, %v481_v21 }
 0x2b6   : > { %524 = vst [vmem:[%s802_s6 + $0x30] sm:$0xff] %v516_v24 }
 0x2b7   : > { %525 = vst [vmem:[%s802_s6 + $0x38] sm:$0xff] %v517_v25 }
 0x2b8   : > { %520 = vst [vmem:[%s802_s6 + $0x10] sm:$0xff] %v512_v26 }
 0x2b9   : > { %521 = vst [vmem:[%s802_s6 + $0x18] sm:$0xff] %v513_v27 }
 0x2ba PF: > { %s15_s22 = sadd.s32 1, %s729_s22   ;;  %s872_s18 = smov %s721_s20 }
 0x2bb   : > { %p12_p8 = scmp.ge.s32.totalorder %s15_s22, 6   ;;  %s873_s19 = smov %s725_s21 }
 0x2bc   : > { %s874_s20 = smov %s877_s23  ;;  %s875_s21 = smov %s881_s24 }
 0x2bd   :  { %14 = sbr.rel (!%p12_p8) target bundleno = 3 (0x3), region = 86 }

</bundles_post_ra>
